<compile_context>
chip_gen: v7x
topology: tpu7x:2x2x1
jax: 0.10.0
libtpu: 0.0.40
codegen_flags: <defaults>
</compile_context>

<pallas_src>
import jax
import jax.numpy as jnp
from jax.experimental import pallas as pl
from jax.experimental.pallas import tpu as pltpu


# ----------------------------- in-kernel math ------------------------------

def _gelu_exact(x):
    """torch.nn.GELU() exact (erf) form; erf via A&S 7.1.26 (|err| ~1.5e-7).

    The 1/(1 + p*|z|) divide uses the EUP approximate reciprocal plus one
    Newton step (EUP slot instead of a slow VPU divide). All math is f32.
    """
    z = x * 0.7071067811865476                       # x / sqrt(2)
    sgn = jnp.where(z >= 0.0, 1.0, -1.0)
    az = jnp.abs(z)
    d = 1.0 + 0.3275911 * az
    t = pl.reciprocal(d, approx=True)
    t = t * (2.0 - d * t)                            # one Newton step
    poly = ((((1.061405429 * t - 1.453152027) * t + 1.421413741) * t
             - 0.284496736) * t + 0.254829592) * t
    erf = sgn * (1.0 - poly * jnp.exp(-az * az))
    return 0.5 * x * (1.0 + erf)


def _make_fused_kernel(IMGS, H, W, Cin, Cout):
    Hp = H // 2
    L1 = W * Cin        # lane width of one stage-1 input row
    L2 = W * Cout       # lane width of one conv output row (128 here)
    M = IMGS * H        # matmul M dimension (images folded into M)

    # Row ordering convention (set up by the wrapper): for every image the
    # rows arrive parity-ordered: rows [0:Hp] are h = 0,2,4,... and rows
    # [Hp:H] are h = 1,3,5,...  Both conv outputs keep this ordering, so the
    # H-direction max-pool is a plain aligned max of the two half-blocks.
    def kernel(x_ref, wb1_ref, bi1_ref, wb2_ref, bi2_ref, o_ref,
               xc1_ref, xc2_ref):
        f32 = jnp.float32

        # ---- stage 1: build the K-folded activation slab -------------------
        # xc[i, j, t*L:(t+1)*L] = input row (h(j) + t - 1), zero outside [0,H)
        e1 = x_ref[:, 0:Hp, :]           # even rows  h = 2*j
        o1 = x_ref[:, Hp:H, :]           # odd rows   h = 2*j + 1

        # tap t=0 (row h-1)
        xc1_ref[:, 0:1, 0:L1] = jnp.zeros((IMGS, 1, L1), f32)
        xc1_ref[:, 1:Hp, 0:L1] = o1[:, 0:Hp - 1, :]
        xc1_ref[:, Hp:H, 0:L1] = e1
        # tap t=1 (row h)
        xc1_ref[:, 0:Hp, L1:2 * L1] = e1
        xc1_ref[:, Hp:H, L1:2 * L1] = o1
        # tap t=2 (row h+1)
        xc1_ref[:, 0:Hp, 2 * L1:3 * L1] = o1
        xc1_ref[:, Hp:H - 1, 2 * L1:3 * L1] = e1[:, 1:Hp, :]
        xc1_ref[:, H - 1:H, 2 * L1:3 * L1] = jnp.zeros((IMGS, 1, L1), f32)

        # One bf16 MXU matmul: dx taps + W zero padding + BN scale are folded
        # into wb1 on the host. f32 accumulate; BN bias + GELU stay f32.
        a1 = jnp.dot(xc1_ref[...].reshape(M, 3 * L1).astype(jnp.bfloat16),
                     wb1_ref[...], preferred_element_type=f32)
        y1 = _gelu_exact(a1 + bi1_ref[...]).reshape(IMGS, H, L2)

        # ---- stage 2 (stage-1 activation never leaves VMEM) ----------------
        e2 = y1[:, 0:Hp, :]
        o2 = y1[:, Hp:H, :]

        xc2_ref[:, 0:1, 0:L2] = jnp.zeros((IMGS, 1, L2), f32)
        xc2_ref[:, 1:Hp, 0:L2] = o2[:, 0:Hp - 1, :]
        xc2_ref[:, Hp:H, 0:L2] = e2

        xc2_ref[:, 0:Hp, L2:2 * L2] = e2
        xc2_ref[:, Hp:H, L2:2 * L2] = o2

        xc2_ref[:, 0:Hp, 2 * L2:3 * L2] = o2
        xc2_ref[:, Hp:H - 1, 2 * L2:3 * L2] = e2[:, 1:Hp, :]
        xc2_ref[:, H - 1:H, 2 * L2:3 * L2] = jnp.zeros((IMGS, 1, L2), f32)

        a2 = jnp.dot(xc2_ref[...].reshape(M, 3 * L2).astype(jnp.bfloat16),
                     wb2_ref[...], preferred_element_type=f32)
        y2 = _gelu_exact(a2 + bi2_ref[...]).reshape(IMGS, H, L2)

        # ---- MaxPool2d(2,2), H direction: aligned max of the parity blocks.
        # Lane-dense (128-wide) store; the W-direction pool is folded into the
        # wrapper's NCHW repack (no lane-splitting reshape inside the kernel).
        o_ref[...] = jnp.maximum(y2[:, 0:Hp, :], y2[:, Hp:H, :])

    return kernel


# ------------------------------ host wrapper --------------------------------

def _banded_conv_weights(w_hwio, W):
    """Fold the 3 dx taps, the W-direction 'SAME' zero padding AND the 3 dy
    taps of a 3x3 conv into one (3*W*Cin, W*Cout) matrix (K is dy-major).

    With xc the per-row activation [row h-1 | row h | row h+1] flattened as
    (W*Cin per tap), xc @ result == conv output row h flattened as (W*Cout).
    """
    dt = w_hwio.dtype
    mats = []
    for dy in range(3):
        m = sum(jnp.kron(jnp.eye(W, k=1 - dx, dtype=dt), w_hwio[dy, dx])
                for dx in range(3))
        mats.append(m)
    return jnp.concatenate(mats, axis=0)


def conv2d_inplace_spatial_forward(x_nchw, params, imgs_per_step=16):
    """Forward pass. x_nchw: (B, Cin, H, W) f32 -> (B, Cout, H//2, W//2) f32.

    imgs_per_step: images folded into the matmul M dimension per grid step
    (matmul M = imgs_per_step * H).  16 targets v6e/v7x's 256-wide MXU, use 8
    for v5e's 128-wide MXU.
    """
    (w1, b1, g1, be1, m1, v1, w2, b2, g2, be2, m2, v2) = params
    eps = 1e-5
    # Fold eval-mode BatchNorm (+ conv bias): scale goes into the weights,
    # bias stays as a per-lane add in the kernel.
    s1 = g1 / jnp.sqrt(v1 + eps)
    t1 = be1 + (b1 - m1) * s1
    s2 = g2 / jnp.sqrt(v2 + eps)
    t2 = be2 + (b2 - m2) * s2

    B, Cin, H, W = x_nchw.shape
    Cout = w1.shape[-1]
    assert H % 2 == 0 and W % 2 == 0, "MaxPool2d(2,2) expects even H and W"
    Hp, Wp = H // 2, W // 2
    L1, L2 = W * Cin, W * Cout

    IMGS = max(1, min(imgs_per_step, B))
    Bpad = ((B + IMGS - 1) // IMGS) * IMGS

    # NCHW -> lane-dense rows (B, H, W*Cin), then parity-order the rows per
    # image (even rows first, odd rows second) so the kernel's H pooling is a
    # plain aligned max.  Both reorders are free XLA-side layout work.
    x_rows = jnp.transpose(x_nchw, (0, 2, 3, 1)).astype(jnp.float32)
    x_rows = x_rows.reshape(B, H, L1)
    x_rows = jnp.concatenate([x_rows[:, 0::2, :], x_rows[:, 1::2, :]], axis=1)
    if Bpad != B:
        x_rows = jnp.concatenate(
            [x_rows, jnp.zeros((Bpad - B, H, L1), jnp.float32)], axis=0)

    # Banded (kron) conv weights with BN scale folded in, cast to bf16 for the
    # MXU; per-lane BN bias stays f32.
    wb1 = (_banded_conv_weights(w1.astype(jnp.float32), W)
           * jnp.tile(s1.astype(jnp.float32), W)[None, :]).astype(jnp.bfloat16)
    wb2 = (_banded_conv_weights(w2.astype(jnp.float32), W)
           * jnp.tile(s2.astype(jnp.float32), W)[None, :]).astype(jnp.bfloat16)
    bi1 = jnp.tile(t1.astype(jnp.float32), W).reshape(1, L2)
    bi2 = jnp.tile(t2.astype(jnp.float32), W).reshape(1, L2)

    kernel = _make_fused_kernel(IMGS, H, W, Cin, Cout)
    out_rows = pl.pallas_call(
        kernel,
        out_shape=jax.ShapeDtypeStruct((Bpad, Hp, L2), jnp.float32),
        grid=(Bpad // IMGS,),
        in_specs=[
            pl.BlockSpec((IMGS, H, L1), lambda g: (g, 0, 0)),
            pl.BlockSpec((3 * L1, L2), lambda g: (0, 0)),
            pl.BlockSpec((1, L2), lambda g: (0, 0)),
            pl.BlockSpec((3 * L2, L2), lambda g: (0, 0)),
            pl.BlockSpec((1, L2), lambda g: (0, 0)),
        ],
        out_specs=pl.BlockSpec((IMGS, Hp, L2), lambda g: (g, 0, 0)),
        scratch_shapes=[
            pltpu.VMEM((IMGS, H, 3 * L1), jnp.float32),  # stage-1 K-folded taps
            pltpu.VMEM((IMGS, H, 3 * L2), jnp.float32),  # stage-2 K-folded taps
        ],
        compiler_params=pltpu.CompilerParams(dimension_semantics=("parallel",)),
    )(x_rows, wb1, bi1, wb2, bi2)

    # Wrapper-side W pooling (pairs of adjacent columns) fused into the NCHW
    # repack: (Bpad, Hp, W*Cout) -> (B, Cout, Hp, Wp).
    out = out_rows[:B].reshape(B, Hp, Wp, 2, Cout).max(axis=3)
    return jnp.transpose(out, (0, 3, 1, 2))


# ----------------------------- pure-JAX references --------------------------

def _reference_forward(x_nchw, params, matmul_dtype=jnp.float32):
    """matmul_dtype=f32: the exact PyTorch-module (eval-mode BN) semantics.
    matmul_dtype=bf16: matches the kernel's numerics (BN scale folded into the
    conv weight, weight+activation rounded to bf16, f32 accumulation)."""
    (w1, b1, g1, be1, m1, v1, w2, b2, g2, be2, m2, v2) = params
    eps = 1e-5

    def stage(x, w, b, g, be, m, v):
        s = g / jnp.sqrt(v + eps)
        t = be + (b - m) * s
        wf = (w * s[None, None, None, :]).astype(matmul_dtype)
        y = jax.lax.conv_general_dilated(
            x.astype(matmul_dtype), wf, window_strides=(1, 1), padding="SAME",
            dimension_numbers=("NHWC", "HWIO", "NHWC"),
            preferred_element_type=jnp.float32)
        return jax.nn.gelu(y + t, approximate=False)

    x = jnp.transpose(x_nchw, (0, 2, 3, 1)).astype(jnp.float32)
    h = stage(x, w1, b1, g1, be1, m1, v1)
    h = stage(h, w2, b2, g2, be2, m2, v2)
    Bh, Hh, Wh, C = h.shape
    h = h.reshape(Bh, Hh // 2, 2, Wh // 2, 2, C).max(axis=(2, 4))
    return jnp.transpose(h, (0, 3, 1, 2))


# --------------------------------- main -------------------------------------

if __name__ == "__main__":
    Cin, Cout, H, W = 4, 8, 16, 16

    key = jax.random.PRNGKey(0)
    ks = jax.random.split(key, 14)

    # Deterministic synthetic parameters (shapes follow the nn.Module).
    # Conv weights kept in HWIO layout (PyTorch stores OIHW; purely layout).
    w1 = 0.2 * jax.random.normal(ks[1], (3, 3, Cin, Cout), jnp.float32)
    b1 = 0.1 * jax.random.normal(ks[2], (Cout,), jnp.float32)
    g1 = 1.0 + 0.1 * jax.random.normal(ks[3], (Cout,), jnp.float32)
    be1 = 0.1 * jax.random.normal(ks[4], (Cout,), jnp.float32)
    m1 = 0.1 * jax.random.normal(ks[5], (Cout,), jnp.float32)
    v1 = 1.0 + 0.2 * jax.random.uniform(ks[6], (Cout,), jnp.float32)

    w2 = 0.2 * jax.random.normal(ks[7], (3, 3, Cout, Cout), jnp.float32)
    b2 = 0.1 * jax.random.normal(ks[8], (Cout,), jnp.float32)
    g2 = 1.0 + 0.1 * jax.random.normal(ks[9], (Cout,), jnp.float32)
    be2 = 0.1 * jax.random.normal(ks[10], (Cout,), jnp.float32)
    m2 = 0.1 * jax.random.normal(ks[11], (Cout,), jnp.float32)
    v2 = 1.0 + 0.2 * jax.random.uniform(ks[12], (Cout,), jnp.float32)

    params = (w1, b1, g1, be1, m1, v1, w2, b2, g2, be2, m2, v2)

    # Test 1: the nominal small shape (B=2 -> one grid step of 2 images).
    # Test 2: B=18 exercises IMGS=16 image batching, batch padding and a
    #         multi-step "parallel" grid.
    x_small = jax.random.normal(ks[0], (2, Cin, H, W), jnp.float32)
    x_big = jax.random.normal(ks[13], (18, Cin, H, W), jnp.float32)

    for x in (x_small, x_big):
        out = jax.block_until_ready(conv2d_inplace_spatial_forward(x, params))
        assert out.shape == (x.shape[0], Cout, H // 2, W // 2), out.shape
        assert bool(jnp.all(jnp.isfinite(out)))

        ref_match = _reference_forward(x, params, matmul_dtype=jnp.bfloat16)
        ref_exact = _reference_forward(x, params, matmul_dtype=jnp.float32)
        err_match = float(jnp.max(jnp.abs(out - ref_match)))
        err_exact = float(jnp.max(jnp.abs(out - ref_exact)))
        # Tight check against the bf16-matmul-matched reference ...
        assert bool(jnp.allclose(out, ref_match, atol=5e-3, rtol=5e-3)), (
            err_match, err_exact)
        # ... and a sanity bound against the exact f32 module semantics.
        assert err_exact < 0.1, err_exact

    print("KERNEL_OK")
</pallas_src>

<mosaic_0001>
module attributes {stable_mosaic.version = 11 : i64} {
  func.func @kernel(%arg0: i32, %arg1: memref<2x16x64xf32, #tpu.memory_space<vmem>>, %arg2: memref<192x128xbf16, #tpu.memory_space<vmem>>, %arg3: memref<1x128xf32, #tpu.memory_space<vmem>>, %arg4: memref<384x128xbf16, #tpu.memory_space<vmem>>, %arg5: memref<1x128xf32, #tpu.memory_space<vmem>>, %arg6: memref<2x8x128xf32, #tpu.memory_space<vmem>>, %arg7: memref<2x16x192xf32, #tpu.memory_space<vmem>>, %arg8: memref<2x16x384xf32, #tpu.memory_space<vmem>>) attributes {dimension_semantics = [#tpu.dimension_semantics<parallel>], iteration_bounds = array<i64: 1>, scalar_prefetch = 0 : i64, scratch_operands = 2 : i64, tpu.core_type = #tpu.core_type<tc>, window_params = [{transform_indices = @transform_0, window_bounds = array<i64: 2, 16, 64>}, {pipeline_mode = #tpu.pipeline_mode<synchronous>, transform_indices = @transform_1, window_bounds = array<i64: 192, 128>}, {pipeline_mode = #tpu.pipeline_mode<synchronous>, transform_indices = @transform_2, window_bounds = array<i64: 1, 128>}, {pipeline_mode = #tpu.pipeline_mode<synchronous>, transform_indices = @transform_3, window_bounds = array<i64: 384, 128>}, {pipeline_mode = #tpu.pipeline_mode<synchronous>, transform_indices = @transform_4, window_bounds = array<i64: 1, 128>}, {transform_indices = @transform_5, window_bounds = array<i64: 2, 8, 128>}]} {
    %c0 = arith.constant 0 : index
    %c0_0 = arith.constant 0 : index
    %c0_1 = arith.constant 0 : index
    %0 = vector.load %arg1[%c0, %c0_0, %c0_1] : memref<2x16x64xf32, #tpu.memory_space<vmem>>, vector<2x8x64xf32>
    %c0_2 = arith.constant 0 : index
    %c8 = arith.constant 8 : index
    %c0_3 = arith.constant 0 : index
    %1 = vector.load %arg1[%c0_2, %c8, %c0_3] : memref<2x16x64xf32, #tpu.memory_space<vmem>>, vector<2x8x64xf32>
    %cst = arith.constant 0.000000e+00 : f32
    %2 = vector.broadcast %cst : f32 to vector<2x1x64xf32>
    %c0_4 = arith.constant 0 : index
    %c0_5 = arith.constant 0 : index
    %c0_6 = arith.constant 0 : index
    %3 = vector.load %arg7[%c0_4, %c0_5, %c0_6] : memref<2x16x192xf32, #tpu.memory_space<vmem>>, vector<2x1x64xf32>
    tpu.vector_store %arg7[%c0_4, %c0_5, %c0_6], %2 {strides = array<i32>} : memref<2x16x192xf32, #tpu.memory_space<vmem>>, vector<2x1x64xf32>,
    %4 = vector.extract_strided_slice %1 {offsets = [0, 0, 0], sizes = [2, 7, 64], strides = [1, 1, 1]} : vector<2x8x64xf32> to vector<2x7x64xf32>
    %c0_7 = arith.constant 0 : index
    %c1 = arith.constant 1 : index
    %c0_8 = arith.constant 0 : index
    %5 = vector.load %arg7[%c0_7, %c1, %c0_8] : memref<2x16x192xf32, #tpu.memory_space<vmem>>, vector<2x7x64xf32>
    tpu.vector_store %arg7[%c0_7, %c1, %c0_8], %4 {strides = array<i32>} : memref<2x16x192xf32, #tpu.memory_space<vmem>>, vector<2x7x64xf32>,
    %c0_9 = arith.constant 0 : index
    %c8_10 = arith.constant 8 : index
    %c0_11 = arith.constant 0 : index
    %6 = vector.load %arg7[%c0_9, %c8_10, %c0_11] : memref<2x16x192xf32, #tpu.memory_space<vmem>>, vector<2x8x64xf32>
    tpu.vector_store %arg7[%c0_9, %c8_10, %c0_11], %0 {strides = array<i32>} : memref<2x16x192xf32, #tpu.memory_space<vmem>>, vector<2x8x64xf32>,
    %c0_12 = arith.constant 0 : index
    %c0_13 = arith.constant 0 : index
    %c64 = arith.constant 64 : index
    %7 = vector.load %arg7[%c0_12, %c0_13, %c64] : memref<2x16x192xf32, #tpu.memory_space<vmem>>, vector<2x8x64xf32>
    tpu.vector_store %arg7[%c0_12, %c0_13, %c64], %0 {strides = array<i32>} : memref<2x16x192xf32, #tpu.memory_space<vmem>>, vector<2x8x64xf32>,
    %c0_14 = arith.constant 0 : index
    %c8_15 = arith.constant 8 : index
    %c64_16 = arith.constant 64 : index
    %8 = vector.load %arg7[%c0_14, %c8_15, %c64_16] : memref<2x16x192xf32, #tpu.memory_space<vmem>>, vector<2x8x64xf32>
    tpu.vector_store %arg7[%c0_14, %c8_15, %c64_16], %1 {strides = array<i32>} : memref<2x16x192xf32, #tpu.memory_space<vmem>>, vector<2x8x64xf32>,
    %c0_17 = arith.constant 0 : index
    %c0_18 = arith.constant 0 : index
    %c128 = arith.constant 128 : index
    %9 = vector.load %arg7[%c0_17, %c0_18, %c128] : memref<2x16x192xf32, #tpu.memory_space<vmem>>, vector<2x8x64xf32>
    tpu.vector_store %arg7[%c0_17, %c0_18, %c128], %1 {strides = array<i32>} : memref<2x16x192xf32, #tpu.memory_space<vmem>>, vector<2x8x64xf32>,
    %10 = vector.extract_strided_slice %0 {offsets = [0, 1, 0], sizes = [2, 7, 64], strides = [1, 1, 1]} : vector<2x8x64xf32> to vector<2x7x64xf32>
    %c0_19 = arith.constant 0 : index
    %c8_20 = arith.constant 8 : index
    %c128_21 = arith.constant 128 : index
    %11 = vector.load %arg7[%c0_19, %c8_20, %c128_21] : memref<2x16x192xf32, #tpu.memory_space<vmem>>, vector<2x7x64xf32>
    tpu.vector_store %arg7[%c0_19, %c8_20, %c128_21], %10 {strides = array<i32>} : memref<2x16x192xf32, #tpu.memory_space<vmem>>, vector<2x7x64xf32>,
    %cst_22 = arith.constant 0.000000e+00 : f32
    %12 = vector.broadcast %cst_22 : f32 to vector<2x1x64xf32>
    %c0_23 = arith.constant 0 : index
    %c15 = arith.constant 15 : index
    %c128_24 = arith.constant 128 : index
    %13 = vector.load %arg7[%c0_23, %c15, %c128_24] : memref<2x16x192xf32, #tpu.memory_space<vmem>>, vector<2x1x64xf32>
    tpu.vector_store %arg7[%c0_23, %c15, %c128_24], %12 {strides = array<i32>} : memref<2x16x192xf32, #tpu.memory_space<vmem>>, vector<2x1x64xf32>,
    %c0_25 = arith.constant 0 : index
    %c0_26 = arith.constant 0 : index
    %c0_27 = arith.constant 0 : index
    %14 = vector.load %arg7[%c0_25, %c0_26, %c0_27] : memref<2x16x192xf32, #tpu.memory_space<vmem>>, vector<2x16x192xf32>
    %15 = vector.shape_cast %14 : vector<2x16x192xf32> to vector<32x192xf32>
    %16 = arith.truncf %15 : vector<32x192xf32> to vector<32x192xbf16>
    %c0_28 = arith.constant 0 : index
    %c0_29 = arith.constant 0 : index
    %17 = vector.load %arg2[%c0_28, %c0_29] : memref<192x128xbf16, #tpu.memory_space<vmem>>, vector<192x128xbf16>
    %cst_30 = arith.constant dense<0.000000e+00> : vector<32x128xf32>
    %18 = tpu.matmul %16, %17, %cst_30 {dimension_numbers = #tpu.dot_dimension_numbers<[1], [0], [0], [1], [0, 0, 1, 1], [], []>} : vector<32x192xbf16>, vector<192x128xbf16>, vector<32x128xf32> -> vector<32x128xf32>
    %c0_31 = arith.constant 0 : index
    %c0_32 = arith.constant 0 : index
    %19 = vector.load %arg3[%c0_31, %c0_32] : memref<1x128xf32, #tpu.memory_space<vmem>>, vector<1x128xf32>
    %20 = vector.broadcast %19 : vector<1x128xf32> to vector<32x128xf32>
    %21 = arith.addf %18, %20 : vector<32x128xf32>
    %cst_33 = arith.constant 0.707106769 : f32
    %22 = vector.broadcast %cst_33 : f32 to vector<32x128xf32>
    %23 = arith.mulf %21, %22 : vector<32x128xf32>
    %cst_34 = arith.constant 0.000000e+00 : f32
    %24 = vector.broadcast %cst_34 : f32 to vector<32x128xf32>
    %25 = arith.cmpf oge, %23, %24 : vector<32x128xf32>
    %cst_35 = arith.constant 1.000000e+00 : f32
    %cst_36 = arith.constant -1.000000e+00 : f32
    %26 = vector.broadcast %cst_35 : f32 to vector<32x128xf32>
    %27 = vector.broadcast %cst_36 : f32 to vector<32x128xf32>
    %28 = arith.select %25, %26, %27 : vector<32x128xi1>, vector<32x128xf32>
    %29 = math.absf %23 : vector<32x128xf32>
    %cst_37 = arith.constant 0.327591091 : f32
    %30 = vector.broadcast %cst_37 : f32 to vector<32x128xf32>
    %31 = arith.mulf %30, %29 : vector<32x128xf32>
    %cst_38 = arith.constant 1.000000e+00 : f32
    %32 = vector.broadcast %cst_38 : f32 to vector<32x128xf32>
    %33 = arith.addf %32, %31 : vector<32x128xf32>
    %34 = tpu.reciprocal %33 {approx = true} : vector<32x128xf32> -> vector<32x128xf32>
    %35 = arith.mulf %33, %34 : vector<32x128xf32>
    %cst_39 = arith.constant 2.000000e+00 : f32
    %36 = vector.broadcast %cst_39 : f32 to vector<32x128xf32>
    %37 = arith.subf %36, %35 : vector<32x128xf32>
    %38 = arith.mulf %34, %37 : vector<32x128xf32>
    %cst_40 = arith.constant 1.06140542 : f32
    %39 = vector.broadcast %cst_40 : f32 to vector<32x128xf32>
    %40 = arith.mulf %39, %38 : vector<32x128xf32>
    %cst_41 = arith.constant 1.45315206 : f32
    %41 = vector.broadcast %cst_41 : f32 to vector<32x128xf32>
    %42 = arith.subf %40, %41 : vector<32x128xf32>
    %43 = arith.mulf %42, %38 : vector<32x128xf32>
    %cst_42 = arith.constant 1.42141378 : f32
    %44 = vector.broadcast %cst_42 : f32 to vector<32x128xf32>
    %45 = arith.addf %43, %44 : vector<32x128xf32>
    %46 = arith.mulf %45, %38 : vector<32x128xf32>
    %cst_43 = arith.constant 0.284496725 : f32
    %47 = vector.broadcast %cst_43 : f32 to vector<32x128xf32>
    %48 = arith.subf %46, %47 : vector<32x128xf32>
    %49 = arith.mulf %48, %38 : vector<32x128xf32>
    %cst_44 = arith.constant 0.254829586 : f32
    %50 = vector.broadcast %cst_44 : f32 to vector<32x128xf32>
    %51 = arith.addf %49, %50 : vector<32x128xf32>
    %52 = arith.mulf %51, %38 : vector<32x128xf32>
    %cst_45 = arith.constant 0.000000e+00 : f32
    %53 = vector.broadcast %cst_45 : f32 to vector<32x128xf32>
    %54 = arith.subf %53, %29 : vector<32x128xf32>
    %55 = arith.mulf %54, %29 : vector<32x128xf32>
    %56 = math.exp %55 : vector<32x128xf32>
    %57 = arith.mulf %52, %56 : vector<32x128xf32>
    %cst_46 = arith.constant 1.000000e+00 : f32
    %58 = vector.broadcast %cst_46 : f32 to vector<32x128xf32>
    %59 = arith.subf %58, %57 : vector<32x128xf32>
    %60 = arith.mulf %28, %59 : vector<32x128xf32>
    %cst_47 = arith.constant 5.000000e-01 : f32
    %61 = vector.broadcast %cst_47 : f32 to vector<32x128xf32>
    %62 = arith.mulf %61, %21 : vector<32x128xf32>
    %cst_48 = arith.constant 1.000000e+00 : f32
    %63 = vector.broadcast %cst_48 : f32 to vector<32x128xf32>
    %64 = arith.addf %63, %60 : vector<32x128xf32>
    %65 = arith.mulf %62, %64 : vector<32x128xf32>
    %66 = vector.shape_cast %65 : vector<32x128xf32> to vector<2x16x128xf32>
    %67 = vector.extract_strided_slice %66 {offsets = [0, 0, 0], sizes = [2, 8, 128], strides = [1, 1, 1]} : vector<2x16x128xf32> to vector<2x8x128xf32>
    %68 = vector.extract_strided_slice %66 {offsets = [0, 8, 0], sizes = [2, 8, 128], strides = [1, 1, 1]} : vector<2x16x128xf32> to vector<2x8x128xf32>
    %cst_49 = arith.constant 0.000000e+00 : f32
    %69 = vector.broadcast %cst_49 : f32 to vector<2x1x128xf32>
    %c0_50 = arith.constant 0 : index
    %c0_51 = arith.constant 0 : index
    %c0_52 = arith.constant 0 : index
    %70 = vector.load %arg8[%c0_50, %c0_51, %c0_52] : memref<2x16x384xf32, #tpu.memory_space<vmem>>, vector<2x1x128xf32>
    tpu.vector_store %arg8[%c0_50, %c0_51, %c0_52], %69 {strides = array<i32>} : memref<2x16x384xf32, #tpu.memory_space<vmem>>, vector<2x1x128xf32>,
    %71 = vector.extract_strided_slice %68 {offsets = [0, 0, 0], sizes = [2, 7, 128], strides = [1, 1, 1]} : vector<2x8x128xf32> to vector<2x7x128xf32>
    %c0_53 = arith.constant 0 : index
    %c1_54 = arith.constant 1 : index
    %c0_55 = arith.constant 0 : index
    %72 = vector.load %arg8[%c0_53, %c1_54, %c0_55] : memref<2x16x384xf32, #tpu.memory_space<vmem>>, vector<2x7x128xf32>
    tpu.vector_store %arg8[%c0_53, %c1_54, %c0_55], %71 {strides = array<i32>} : memref<2x16x384xf32, #tpu.memory_space<vmem>>, vector<2x7x128xf32>,
    %c0_56 = arith.constant 0 : index
    %c8_57 = arith.constant 8 : index
    %c0_58 = arith.constant 0 : index
    %73 = vector.load %arg8[%c0_56, %c8_57, %c0_58] : memref<2x16x384xf32, #tpu.memory_space<vmem>>, vector<2x8x128xf32>
    tpu.vector_store %arg8[%c0_56, %c8_57, %c0_58], %67 {strides = array<i32>} : memref<2x16x384xf32, #tpu.memory_space<vmem>>, vector<2x8x128xf32>,
    %c0_59 = arith.constant 0 : index
    %c0_60 = arith.constant 0 : index
    %c128_61 = arith.constant 128 : index
    %74 = vector.load %arg8[%c0_59, %c0_60, %c128_61] : memref<2x16x384xf32, #tpu.memory_space<vmem>>, vector<2x8x128xf32>
    tpu.vector_store %arg8[%c0_59, %c0_60, %c128_61], %67 {strides = array<i32>} : memref<2x16x384xf32, #tpu.memory_space<vmem>>, vector<2x8x128xf32>,
    %c0_62 = arith.constant 0 : index
    %c8_63 = arith.constant 8 : index
    %c128_64 = arith.constant 128 : index
    %75 = vector.load %arg8[%c0_62, %c8_63, %c128_64] : memref<2x16x384xf32, #tpu.memory_space<vmem>>, vector<2x8x128xf32>
    tpu.vector_store %arg8[%c0_62, %c8_63, %c128_64], %68 {strides = array<i32>} : memref<2x16x384xf32, #tpu.memory_space<vmem>>, vector<2x8x128xf32>,
    %c0_65 = arith.constant 0 : index
    %c0_66 = arith.constant 0 : index
    %c256 = arith.constant 256 : index
    %76 = vector.load %arg8[%c0_65, %c0_66, %c256] : memref<2x16x384xf32, #tpu.memory_space<vmem>>, vector<2x8x128xf32>
    tpu.vector_store %arg8[%c0_65, %c0_66, %c256], %68 {strides = array<i32>} : memref<2x16x384xf32, #tpu.memory_space<vmem>>, vector<2x8x128xf32>,
    %77 = vector.extract_strided_slice %67 {offsets = [0, 1, 0], sizes = [2, 7, 128], strides = [1, 1, 1]} : vector<2x8x128xf32> to vector<2x7x128xf32>
    %c0_67 = arith.constant 0 : index
    %c8_68 = arith.constant 8 : index
    %c256_69 = arith.constant 256 : index
    %78 = vector.load %arg8[%c0_67, %c8_68, %c256_69] : memref<2x16x384xf32, #tpu.memory_space<vmem>>, vector<2x7x128xf32>
    tpu.vector_store %arg8[%c0_67, %c8_68, %c256_69], %77 {strides = array<i32>} : memref<2x16x384xf32, #tpu.memory_space<vmem>>, vector<2x7x128xf32>,
    %cst_70 = arith.constant 0.000000e+00 : f32
    %79 = vector.broadcast %cst_70 : f32 to vector<2x1x128xf32>
    %c0_71 = arith.constant 0 : index
    %c15_72 = arith.constant 15 : index
    %c256_73 = arith.constant 256 : index
    %80 = vector.load %arg8[%c0_71, %c15_72, %c256_73] : memref<2x16x384xf32, #tpu.memory_space<vmem>>, vector<2x1x128xf32>
    tpu.vector_store %arg8[%c0_71, %c15_72, %c256_73], %79 {strides = array<i32>} : memref<2x16x384xf32, #tpu.memory_space<vmem>>, vector<2x1x128xf32>,
    %c0_74 = arith.constant 0 : index
    %c0_75 = arith.constant 0 : index
    %c0_76 = arith.constant 0 : index
    %81 = vector.load %arg8[%c0_74, %c0_75, %c0_76] : memref<2x16x384xf32, #tpu.memory_space<vmem>>, vector<2x16x384xf32>
    %82 = vector.shape_cast %81 : vector<2x16x384xf32> to vector<32x384xf32>
    %83 = arith.truncf %82 : vector<32x384xf32> to vector<32x384xbf16>
    %c0_77 = arith.constant 0 : index
    %c0_78 = arith.constant 0 : index
    %84 = vector.load %arg4[%c0_77, %c0_78] : memref<384x128xbf16, #tpu.memory_space<vmem>>, vector<384x128xbf16>
    %cst_79 = arith.constant dense<0.000000e+00> : vector<32x128xf32>
    %85 = tpu.matmul %83, %84, %cst_79 {dimension_numbers = #tpu.dot_dimension_numbers<[1], [0], [0], [1], [0, 0, 1, 1], [], []>} : vector<32x384xbf16>, vector<384x128xbf16>, vector<32x128xf32> -> vector<32x128xf32>
    %c0_80 = arith.constant 0 : index
    %c0_81 = arith.constant 0 : index
    %86 = vector.load %arg5[%c0_80, %c0_81] : memref<1x128xf32, #tpu.memory_space<vmem>>, vector<1x128xf32>
    %87 = vector.broadcast %86 : vector<1x128xf32> to vector<32x128xf32>
    %88 = arith.addf %85, %87 : vector<32x128xf32>
    %cst_82 = arith.constant 0.707106769 : f32
    %89 = vector.broadcast %cst_82 : f32 to vector<32x128xf32>
    %90 = arith.mulf %88, %89 : vector<32x128xf32>
    %cst_83 = arith.constant 0.000000e+00 : f32
    %91 = vector.broadcast %cst_83 : f32 to vector<32x128xf32>
    %92 = arith.cmpf oge, %90, %91 : vector<32x128xf32>
    %cst_84 = arith.constant 1.000000e+00 : f32
    %cst_85 = arith.constant -1.000000e+00 : f32
    %93 = vector.broadcast %cst_84 : f32 to vector<32x128xf32>
    %94 = vector.broadcast %cst_85 : f32 to vector<32x128xf32>
    %95 = arith.select %92, %93, %94 : vector<32x128xi1>, vector<32x128xf32>
    %96 = math.absf %90 : vector<32x128xf32>
    %cst_86 = arith.constant 0.327591091 : f32
    %97 = vector.broadcast %cst_86 : f32 to vector<32x128xf32>
    %98 = arith.mulf %97, %96 : vector<32x128xf32>
    %cst_87 = arith.constant 1.000000e+00 : f32
    %99 = vector.broadcast %cst_87 : f32 to vector<32x128xf32>
    %100 = arith.addf %99, %98 : vector<32x128xf32>
    %101 = tpu.reciprocal %100 {approx = true} : vector<32x128xf32> -> vector<32x128xf32>
    %102 = arith.mulf %100, %101 : vector<32x128xf32>
    %cst_88 = arith.constant 2.000000e+00 : f32
    %103 = vector.broadcast %cst_88 : f32 to vector<32x128xf32>
    %104 = arith.subf %103, %102 : vector<32x128xf32>
    %105 = arith.mulf %101, %104 : vector<32x128xf32>
    %cst_89 = arith.constant 1.06140542 : f32
    %106 = vector.broadcast %cst_89 : f32 to vector<32x128xf32>
    %107 = arith.mulf %106, %105 : vector<32x128xf32>
    %cst_90 = arith.constant 1.45315206 : f32
    %108 = vector.broadcast %cst_90 : f32 to vector<32x128xf32>
    %109 = arith.subf %107, %108 : vector<32x128xf32>
    %110 = arith.mulf %109, %105 : vector<32x128xf32>
    %cst_91 = arith.constant 1.42141378 : f32
    %111 = vector.broadcast %cst_91 : f32 to vector<32x128xf32>
    %112 = arith.addf %110, %111 : vector<32x128xf32>
    %113 = arith.mulf %112, %105 : vector<32x128xf32>
    %cst_92 = arith.constant 0.284496725 : f32
    %114 = vector.broadcast %cst_92 : f32 to vector<32x128xf32>
    %115 = arith.subf %113, %114 : vector<32x128xf32>
    %116 = arith.mulf %115, %105 : vector<32x128xf32>
    %cst_93 = arith.constant 0.254829586 : f32
    %117 = vector.broadcast %cst_93 : f32 to vector<32x128xf32>
    %118 = arith.addf %116, %117 : vector<32x128xf32>
    %119 = arith.mulf %118, %105 : vector<32x128xf32>
    %cst_94 = arith.constant 0.000000e+00 : f32
    %120 = vector.broadcast %cst_94 : f32 to vector<32x128xf32>
    %121 = arith.subf %120, %96 : vector<32x128xf32>
    %122 = arith.mulf %121, %96 : vector<32x128xf32>
    %123 = math.exp %122 : vector<32x128xf32>
    %124 = arith.mulf %119, %123 : vector<32x128xf32>
    %cst_95 = arith.constant 1.000000e+00 : f32
    %125 = vector.broadcast %cst_95 : f32 to vector<32x128xf32>
    %126 = arith.subf %125, %124 : vector<32x128xf32>
    %127 = arith.mulf %95, %126 : vector<32x128xf32>
    %cst_96 = arith.constant 5.000000e-01 : f32
    %128 = vector.broadcast %cst_96 : f32 to vector<32x128xf32>
    %129 = arith.mulf %128, %88 : vector<32x128xf32>
    %cst_97 = arith.constant 1.000000e+00 : f32
    %130 = vector.broadcast %cst_97 : f32 to vector<32x128xf32>
    %131 = arith.addf %130, %127 : vector<32x128xf32>
    %132 = arith.mulf %129, %131 : vector<32x128xf32>
    %133 = vector.shape_cast %132 : vector<32x128xf32> to vector<2x16x128xf32>
    %134 = vector.extract_strided_slice %133 {offsets = [0, 0, 0], sizes = [2, 8, 128], strides = [1, 1, 1]} : vector<2x16x128xf32> to vector<2x8x128xf32>
    %135 = vector.extract_strided_slice %133 {offsets = [0, 8, 0], sizes = [2, 8, 128], strides = [1, 1, 1]} : vector<2x16x128xf32> to vector<2x8x128xf32>
    %136 = arith.maximumf %134, %135 : vector<2x8x128xf32>
    %c0_98 = arith.constant 0 : index
    %c0_99 = arith.constant 0 : index
    %c0_100 = arith.constant 0 : index
    %137 = vector.load %arg6[%c0_98, %c0_99, %c0_100] : memref<2x8x128xf32, #tpu.memory_space<vmem>>, vector<2x8x128xf32>
    tpu.vector_store %arg6[%c0_98, %c0_99, %c0_100], %136 {strides = array<i32>} : memref<2x8x128xf32, #tpu.memory_space<vmem>>, vector<2x8x128xf32>,
    return
  }
  func.func @transform_0(%arg0: i32) -> (i32, i32, i32) {
    %c0_i32 = arith.constant 0 : i32
    %c0_i32_0 = arith.constant 0 : i32
    %c0_i32_1 = arith.constant 0 : i32
    return %arg0, %c0_i32, %c0_i32_0 : i32, i32, i32
  }
  func.func @transform_1(%arg0: i32) -> (i32, i32) {
    %c0_i32 = arith.constant 0 : i32
    %c0_i32_0 = arith.constant 0 : i32
    %c0_i32_1 = arith.constant 0 : i32
    return %c0_i32, %c0_i32_0 : i32, i32
  }
  func.func @transform_2(%arg0: i32) -> (i32, i32) {
    %c0_i32 = arith.constant 0 : i32
    %c0_i32_0 = arith.constant 0 : i32
    %c0_i32_1 = arith.constant 0 : i32
    return %c0_i32, %c0_i32_0 : i32, i32
  }
  func.func @transform_3(%arg0: i32) -> (i32, i32) {
    %c0_i32 = arith.constant 0 : i32
    %c0_i32_0 = arith.constant 0 : i32
    %c0_i32_1 = arith.constant 0 : i32
    return %c0_i32, %c0_i32_0 : i32, i32
  }
  func.func @transform_4(%arg0: i32) -> (i32, i32) {
    %c0_i32 = arith.constant 0 : i32
    %c0_i32_0 = arith.constant 0 : i32
    %c0_i32_1 = arith.constant 0 : i32
    return %c0_i32, %c0_i32_0 : i32, i32
  }
  func.func @transform_5(%arg0: i32) -> (i32, i32, i32) {
    %c0_i32 = arith.constant 0 : i32
    %c0_i32_0 = arith.constant 0 : i32
    %c0_i32_1 = arith.constant 0 : i32
    return %arg0, %c0_i32, %c0_i32_0 : i32, i32, i32
  }
}

</mosaic_0001>

<bundles_post_ra>
// kernel: tpu_custom_call.1
= control target key start
LH: loop header
LB: loop body
LE: loop exit
PB: predicated region body
PF: predicated region fallthrough
CT: control target
= control target key end

     0   :  { %10 = vsyncpa [#allocation5], 0  ;;  %s1375_s0 = inlined_call_operand.hbm [shape: f32[2,16,64], index: 0, kind: input, shape index: {}]   ;;  %s1376_s1 = inlined_call_operand.hbm [shape: bf16[192,128], index: 1, kind: input, shape index: {}]   ;;  %s1377_s2 = inlined_call_operand.vmem [shape: f32[1,128], index: 2, kind: input, shape index: {}]   ;;  %s1378_s3 = inlined_call_operand.hbm [shape: bf16[384,128], index: 3, kind: input, shape index: {}]   ;;  %s1379_s4 = inlined_call_operand.vmem [shape: f32[1,128], index: 4, kind: input, shape index: {}]   ;;  %s1380_s5 = inlined_call_operand.hbm [shape: f32[2,8,128], index: 5, kind: output, shape index: {}]  }
   0x1   :  { %11 = vsyncpa [#allocation8], 0 }
   0x2   :  { %12 = vsyncpa [#allocation6], 0  ;;  %s1166_s18 = smov [#allocation7]   ;;  %s1072_s22 = scalar_lea.hbm %s1376_s1, 1536 }
   0x3   :  { %s30_s19 = sshll.u32 %s1166_s18, 4  ;;  %p1073_p0 = scmp.ne.s32.totalorder %s1376_s1, %s1072_s22  ;;  %s31_s19 = int_to_ptr.vmem [resolvable:$true] %s30_s19 }
   0x4   :  { %p1076_p1 = scmp.lt.u32.totalorder %s1072_s22, %s1376_s1 }
   0x6   :  { %p1078_p2 = pnand %p1076_p1, %p1073_p0 }
   0x8   :  { %1081 = shalt.err (!%p1078_p2)
}
   0x9   :  { %s1082_s27 = scalar_lea.vmem %s31_s19, 1536  ;;  %p1087_p4 = scmp.lt.s32.totalorder %s31_s19, %s31_s19 }
   0xa   :  { %p1083_p3 = scmp.ne.s32.totalorder %s31_s19, %s1082_s27  ;;  %p1088_p5 = scmp.lt.s32.totalorder %s1082_s27, %s1082_s27 }
   0xc   :  { %p1089_p6 = por %p1088_p5, %p1087_p4 }
   0xe   :  { %p1090_p7 = pnand %p1089_p6, %p1083_p3 }
  0x10   :  { %1093 = shalt.err (!%p1090_p7)
}
  0x11   :  { %s1167_s28 = smov 64   ;;  %s1168_s29 = smov 4  }
  0x12   :  { %36 = dma.hbm_to_vmem [thread:$0]  %s1376_s1, 1536, %s31_s19, [#allocation8], %s1167_s28, %s1167_s28, %s1168_s29  }
  0x13   :  { %s1169_s7 = smov [#allocation4]   ;;  %s1094_s11 = scalar_lea.hbm %s1375_s0, 512 }
  0x14   :  { %s18_s8 = sshll.u32 %s1169_s7, 4  ;;  %p1095_p8 = scmp.ne.s32.totalorder %s1375_s0, %s1094_s11  ;;  %s19_s8 = int_to_ptr.vmem [resolvable:$true] %s18_s8 }
  0x15   :  { %p1098_p9 = scmp.lt.u32.totalorder %s1094_s11, %s1375_s0 }
  0x17   :  { %p1100_p10 = pnand %p1098_p9, %p1095_p8 }
  0x19   :  { %1103 = shalt.err (!%p1100_p10)
}
  0x1a   :  { %s1104_s16 = scalar_lea.vmem %s19_s8, 512  ;;  %p1109_p12 = scmp.lt.s32.totalorder %s19_s8, %s19_s8 }
  0x1b   :  { %p1105_p11 = scmp.ne.s32.totalorder %s19_s8, %s1104_s16  ;;  %p1110_p13 = scmp.lt.s32.totalorder %s1104_s16, %s1104_s16 }
  0x1d   :  { %p1111_p0 = por %p1110_p13, %p1109_p12 }
  0x1f   :  { %p1112_p1 = pnand %p1111_p0, %p1105_p11 }
  0x21   :  { %1115 = shalt.err (!%p1112_p1)
}
  0x22   :  { %s1170_s1 = smov 128   ;;  %s1171_s17 = smov 8  }
  0x23   :  { %24 = dma.hbm_to_vmem [thread:$0]  %s1375_s0, 512, %s19_s8, [#allocation5], %s1170_s1, %s1170_s1, %s1171_s17  }
  0x24   :  { %s1172_s20 = smov [#allocation9]   ;;  %s1116_s24 = scalar_lea.hbm %s1378_s3, 3072 }
  0x25   :  { %s44_s21 = sshll.u32 %s1172_s20, 4  ;;  %p1117_p2 = scmp.ne.s32.totalorder %s1378_s3, %s1116_s24  ;;  %s45_s21 = int_to_ptr.vmem [resolvable:$true] %s44_s21 }
  0x26   :  { %p1120_p3 = scmp.lt.u32.totalorder %s1116_s24, %s1378_s3 }
  0x28   :  { %p1122_p4 = pnand %p1120_p3, %p1117_p2 }
  0x2a   :  { %1125 = shalt.err (!%p1122_p4)
}
  0x2b   :  { %s1126_s6 = scalar_lea.vmem %s45_s21, 3072  ;;  %p1131_p6 = scmp.lt.s32.totalorder %s45_s21, %s45_s21 }
  0x2c   :  { %p1127_p5 = scmp.ne.s32.totalorder %s45_s21, %s1126_s6  ;;  %p1132_p7 = scmp.lt.s32.totalorder %s1126_s6, %s1126_s6 }
  0x2e   :  { %p1133_p8 = por %p1132_p7, %p1131_p6 }
  0x30   :  { %p1134_p9 = pnand %p1133_p8, %p1127_p5 }
  0x32   :  { %1137 = shalt.err (!%p1134_p9)
}
  0x33   :  { %50 = dma.hbm_to_vmem [thread:$0]  %s1378_s3, 3072, %s45_s21, [#allocation8], %s1167_s28, %s1167_s28, %s1168_s29  }
  0x34   :  { %1160 = dma.done.wait [#allocation5], 512  }
  0x35   :  { %1161 = vsyncadd [#allocation5], 4294966784 }
  0x36   :  { %1162 = dma.done.wait [#allocation8], 4608  }
  0x37   :  { %1163 = vsyncadd [#allocation8], 4294962688  ;;  %v1173_v0 = vmov 0   ;;  %vm67_vm0 = vcmask 516096   ;;  %v1174_v1 = vmov 0.0   ;;  %vm79_vm1 = vcmask 523264  }
  0x38   :  { %233 = vmatprep.subr.bf16.mxu0 %v1173_v0  ;;  %68 = vst.msk [vmem:[#allocation2] sm:$0x1] %vm67_vm0, %v1174_v1  ;;  %110 = vst.msk [vmem:[#allocation2 + $0x1f] sm:$0x1] %vm67_vm0, %v1174_v1  ;;  %v63_v2 = vld [vmem:[#allocation4] sm:$0xff]  ;;  %vm107_vm2 = vcmask 522240  }
  0x39   :  { %111 = vst.msk [vmem:[#allocation2 + $0x3f] sm:$0x1] %vm67_vm0, %v1174_v1  ;;  %425 = vst [vmem:[#allocation3 + $0x5f] sm:$0x1] %v1174_v1  ;;  %v65_v3 = vld [vmem:[#allocation4 + $0x8] sm:$0xff]  ;;  %vm76_vm3 = vcmask 523265   ;;  %84 = vrot.lane.b32.xlu0 %v63_v2, %s1167_s28 }
  0x3a   :  { %69 = vst.msk [vmem:[#allocation2 + $0x20] sm:$0x1] %vm67_vm0, %v1174_v1  ;;  %398 = vst [vmem:[#allocation3] sm:$0x1] %v1174_v1  ;;  %v64_v4 = vld [vmem:[#allocation4 + $0x10] sm:$0xff]  ;;  %v103_v5 = vrot.slane %v63_v2, 1 }
  0x3b   :  { %399 = vst [vmem:[#allocation3 + $0x30] sm:$0x1] %v1174_v1  ;;  %424 = vst [vmem:[#allocation3 + $0x2f] sm:$0x1] %v1174_v1  ;;  %v72_v6 = vrot.slane %v65_v3, 7  ;;  %86 = vrot.lane.b32.xlu1 %v64_v4, %s1167_s28  ;;  %v104_v7 = vrot.slane %v64_v4, 1 }
  0x3c   :  { %80 = vst.msk [vmem:[#allocation2 + $0x10] sm:$0xff] %vm79_vm1, %v63_v2  ;;  %101 = vst.msk [vmem:[#allocation2 + $0x8] sm:$0xff] %vm79_vm1, %v65_v3  ;;  %v66_v8 = vld [vmem:[#allocation4 + $0x18] sm:$0xff]  ;;  %v1004_v10 = vld [vmem:[#allocation7] sm:$0xff]   ;;  %vm90_vm4 = vcmask 1048064  }
  0x3d   :  { %81 = vst.msk [vmem:[#allocation2 + $0x30] sm:$0xff] %vm79_vm1, %v64_v4  ;;  %v73_v9 = vrot.slane %v66_v8, 7  ;;  %102 = vst.msk [vmem:[#allocation2 + $0x28] sm:$0xff] %vm79_vm1, %v66_v8  ;;  %234 = vmatpush1.bf16.msra.mxu0 %v1004_v10  ;;  %v1005_v11 = vld [vmem:[#allocation7 + $0x8] sm:$0xff]   ;;  %93 = vrot.lane.b32.xlu0 %v65_v3, %s1167_s28  ;;  %v1006_v12 = vld [vmem:[#allocation7 + $0x10] sm:$0xff]  }
  0x3e   :  { %108 = vst.msk [vmem:[#allocation2 + $0x18] sm:$0x7f] %vm107_vm2, %v103_v5  ;;  %109 = vst.msk [vmem:[#allocation2 + $0x38] sm:$0x7f] %vm107_vm2, %v104_v7  ;;  %235 = vmatprep.subr.bf16.mxu0 %v1173_v0  ;;  %v1007_v13 = vld [vmem:[#allocation7 + $0x18] sm:$0xff]   ;;  %v1008_v16 = vld [vmem:[#allocation7 + $0x20] sm:$0xff]  }
  0x3f   :  { %77 = vst.msk [vmem:[#allocation2] sm:$0xfe] %vm76_vm3, %v72_v6  ;;  %78 = vst.msk [vmem:[#allocation2 + $0x20] sm:$0xfe] %vm76_vm3, %v73_v9  ;;  %95 = vrot.lane.b32.xlu1 %v66_v8, %s1167_s28  ;;  %v1009_v18 = vld [vmem:[#allocation7 + $0x28] sm:$0xff]   ;;  %v1010_v19 = vld [vmem:[#allocation7 + $0x30] sm:$0xff]  }
  0x40   :  { %v1011_v20 = vld [vmem:[#allocation7 + $0x38] sm:$0xff]   ;;  %v1012_v21 = vld [vmem:[#allocation7 + $0x40] sm:$0xff]   ;;  %v1013_v22 = vld [vmem:[#allocation7 + $0x48] sm:$0xff]  }
  0x41   :  { %236 = vmatpush1.bf16.msra.mxu0 %v1005_v11  ;;  %v1014_v23 = vld [vmem:[#allocation7 + $0x50] sm:$0xff]   ;;  %v1015_v24 = vld [vmem:[#allocation7 + $0x58] sm:$0xff]   ;;  %v1016_v38 = vld [vmem:[#allocation9 + $0x40] sm:$0xff]  }
  0x42   :  { %237 = vmatprep.subr.bf16.mxu0 %v1173_v0  ;;  %v1017_v39 = vld [vmem:[#allocation9] sm:$0xff]   ;;  %935 = vmatprep.subr.bf16.mxu1 %v1016_v38  ;;  %v1018_v40 = vld [vmem:[#allocation9 + $0x48] sm:$0xff]   ;;  %v1020_v42 = vld [vmem:[#allocation9 + $0x50] sm:$0xff]  }
  0x43   :  { %v113_v14 = vld [vmem:[#allocation2 + $0x8] sm:$0xff]  ;;  %936 = vmatpush3.bf16.msra.mxu1 %v1017_v39  ;;  %v1021_v43 = vld [vmem:[#allocation9 + $0x10] sm:$0xff]   ;;  %v1022_v44 = vld [vmem:[#allocation9 + $0x58] sm:$0xff]  }
  0x44   :  { %v117_v29 = vld [vmem:[#allocation2 + $0x28] sm:$0xff]  ;;  %937 = vmatprep.subr.bf16.mxu1 %v1018_v40  ;;  %v1023_v45 = vld [vmem:[#allocation9 + $0x18] sm:$0xff]   ;;  %v1024_v46 = vld [vmem:[#allocation9 + $0x60] sm:$0xff]  }
  0x45   :  { %238 = vmatpush1.bf16.msra.mxu0 %v1006_v12  ;;  %v115_v15 = vld [vmem:[#allocation2 + $0x18] sm:$0xff]  ;;  %v1019_v41 = vld [vmem:[#allocation9 + $0x8] sm:$0xff]   ;;  %v1025_v47 = vld [vmem:[#allocation9 + $0x20] sm:$0xff]  }
  0x46   :  { %239 = vmatprep.subr.bf16.mxu0 %v1173_v0  ;;  %v121_v17 = vpack.c.bf16 %v115_v15, %v113_v14  ;;  %v119_v30 = vld [vmem:[#allocation2 + $0x38] sm:$0xff]  ;;  %v1026_v48 = vld [vmem:[#allocation9 + $0x68] sm:$0xff]   ;;  %v1028_v50 = vld [vmem:[#allocation9 + $0x70] sm:$0xff]  }
  0x47   :  { %v123_v33 = vpack.c.bf16 %v119_v30, %v117_v29  ;;  %938 = vmatpush3.bf16.msra.mxu1 %v1019_v41  ;;  %v1027_v49 = vld [vmem:[#allocation9 + $0x28] sm:$0xff]   ;;  %v1029_v51 = vld [vmem:[#allocation9 + $0x30] sm:$0xff]   ;;  %v1030_v52 = vld [vmem:[#allocation9 + $0x78] sm:$0xff]  }
  0x48   :  { %892 = vmatprep.mubr.msk.bf16.mxu0 %vm79_vm1, %v121_v17  ;;  %939 = vmatprep.subr.bf16.mxu1 %v1020_v42  ;;  %v1031_v53 = vld [vmem:[#allocation9 + $0x38] sm:$0xff]   ;;  %v1278_v54 = vld [vmem:[#allocation9 + $0x80] sm:$0xff]  }
  0x49   :  { %240 = vmatpush1.bf16.msra.mxu0 %v1007_v13  ;;  %v879_v55 = vld [vmem:[%s1377_s2] ss:$0 sm:$0xff] }
  0x4a   :  { %241 = vmatprep.subr.bf16.mxu0 %v1173_v0 }
  0x4b   :  { %940 = vmatpush3.bf16.msra.mxu1 %v1021_v43 }
  0x4c   :  { %941 = vmatprep.subr.bf16.mxu1 %v1022_v44 }
  0x4d   :  { %242 = vmatpush1.bf16.msra.mxu0 %v1008_v16 }
  0x4e   :  { %243 = vmatprep.subr.bf16.mxu0 %v1173_v0 }
  0x4f   :  { %942 = vmatpush3.bf16.msra.mxu1 %v1023_v45 }
  0x50   :  { %943 = vmatprep.subr.bf16.mxu1 %v1024_v46 }
  0x51   :  { %244 = vmatpush1.bf16.msra.mxu0 %v1009_v18 }
  0x52   :  { %245 = vmatprep.subr.bf16.mxu0 %v1173_v0 }
  0x53   :  { %944 = vmatpush3.bf16.msra.mxu1 %v1025_v47 }
  0x54   :  { %945 = vmatprep.subr.bf16.mxu1 %v1026_v48 }
  0x55   :  { %246 = vmatpush1.bf16.msra.mxu0 %v1010_v19 }
  0x56   :  { %247 = vmatprep.subr.bf16.mxu0 %v1173_v0 }
  0x57   :  { %946 = vmatpush3.bf16.msra.mxu1 %v1027_v49 }
  0x58   :  { %947 = vmatprep.subr.bf16.mxu1 %v1028_v50 }
  0x59   :  { %248 = vmatpush1.bf16.msra.mxu0 %v1011_v20 }
  0x5a   :  { %249 = vmatprep.subr.bf16.mxu0 %v1173_v0 }
  0x5b   :  { %948 = vmatpush3.bf16.msra.mxu1 %v1029_v51 }
  0x5c   :  { %949 = vmatprep.subr.bf16.mxu1 %v1030_v52 }
  0x5d   :  { %250 = vmatpush1.bf16.msra.mxu0 %v1012_v21 }
  0x5e   :  { %251 = vmatprep.subr.bf16.mxu0 %v1173_v0 }
  0x5f   :  { %950 = vmatpush3.bf16.msra.mxu1 %v1031_v53 }
  0x60   :  { %973 = vmatprep.subr.bf16.mxu1 %v1278_v54 }
  0x61   :  { %252 = vmatpush1.bf16.msra.mxu0 %v1013_v22 }
  0x62   :  { %253 = vmatprep.subr.bf16.mxu0 %v1173_v0 }
  0x65   :  { %254 = vmatpush1.bf16.msra.mxu0 %v1014_v23 }
  0x66   :  { %255 = vmatprep.subr.bf16.mxu0 %v1173_v0 }
  0x69   :  { %256 = vmatpush1.bf16.msra.mxu0 %v1015_v24 }
  0xab   :  { %v85_v25 = vpop.permute.xlu0 %84 }
  0xac   :  { %91 = vst.msk [vmem:[#allocation2] sm:$0xff] %vm90_vm4, %v85_v25 }
  0xad   :  { %v87_v26 = vpop.permute.xlu1 %86 }
  0xae   :  { %92 = vst.msk [vmem:[#allocation2 + $0x20] sm:$0xff] %vm90_vm4, %v87_v26 }
  0xaf   :  { %v94_v27 = vpop.permute.xlu0 %93 }
  0xb0   :  { %99 = vst.msk [vmem:[#allocation2 + $0x10] sm:$0xff] %vm90_vm4, %v94_v27 }
  0xb1   :  { %v96_v28 = vpop.permute.xlu1 %95 }
  0xb2   :  { %100 = vst.msk [vmem:[#allocation2 + $0x30] sm:$0xff] %vm90_vm4, %v96_v28 }
  0xb3   :  { %v112_v31 = vld [vmem:[#allocation2] sm:$0xff] }
  0xb5   :  { %v116_v35 = vld [vmem:[#allocation2 + $0x20] sm:$0xff] }
  0xb7   :  { %v114_v32 = vld [vmem:[#allocation2 + $0x10] sm:$0xff] }
  0xb8   :  { %v120_v34 = vpack.c.bf16 %v114_v32, %v112_v31 }
  0xb9   :  { %v118_v36 = vld [vmem:[#allocation2 + $0x30] sm:$0xff] }
  0xba   :  { %266 = vmatmul.mubr.bf16.vlgmr.msra.gmra.mrb[0].mxu0 %v120_v34  ;;  %v122_v37 = vpack.c.bf16 %v118_v36, %v116_v35 }
  0xbb   :  { %893 = vmatprep.mubr.msk.bf16.mxu0 %vm79_vm1, %v123_v33 }
  0xc2   :  { %274 = vmatmul.mubr.bf16.gmra.mrb[4].mxu0 %v122_v37 }
 0x18d   :  { %v267_v56 = vpop.f32.mrb[0].mxu0 }
 0x18e   :  { %v1284_v57 = vadd.f32 %v879_v55, %v267_v56  ;;  %v269_v58 = vpop.f32.mrb[1].mxu0 }
 0x18f   :  { %v270_v59 = vpop.f32.mrb[2].mxu0 }
 0x190   :  { %v1287_v60 = vmul.f32 0.70710677, %v1284_v57  ;;  %v1289_v61 = vadd.f32 %v879_v55, %v270_v59  ;;  %v272_v62 = vpop.f32.mrb[3].mxu0 }
 0x192   :  { %v294_v63 = vand.u32 2147483647, %v1287_v60  ;;  %v1293_v0 = vmul.f32 0.70710677, %v1289_v61  ;;  %vm286_vm5 = vcmp.ge.f32.partialorder %v1287_v60, 0.0  ;;  %v386_v60 = vmul.f32 0.5, %v1284_v57 }
 0x194   :  { %v298_v1 = vmul.f32 0.3275911, %v294_v63  ;;  %v295_v2 = vand.u32 2147483647, %v1293_v0  ;;  %v358_v22 = vsub.f32 0.0, %v294_v63  ;;  %vm287_vm6 = vcmp.ge.f32.partialorder %v1293_v0, 0.0 }
 0x195   :  { %v275_v3 = vpop.f32.mrb[4].mxu0 }
 0x196   :  { %v302_v4 = vadd.f32 1.0, %v298_v1  ;;  %v299_v5 = vmul.f32 0.3275911, %v295_v2  ;;  %v277_v6 = vpop.f32.mrb[5].mxu0  ;;  %v1296_v7 = vadd.f32 %v879_v55, %v275_v3  ;;  %v359_v27 = vsub.f32 0.0, %v295_v2 }
 0x197   :  { %v278_v8 = vpop.f32.mrb[6].mxu0  ;;  %v362_v28 = vmul.f32 %v358_v22, %v294_v63 }
 0x198   :  { %1040 = vrcp.f32 %v302_v4  ;;  %v303_v9 = vadd.f32 1.0, %v299_v5  ;;  %v280_v10 = vpop.f32.mrb[7].mxu0  ;;  %v1299_v11 = vmul.f32 0.70710677, %v1296_v7  ;;  %v1301_v12 = vadd.f32 %v879_v55, %v278_v8 }
 0x199   :  { %v363_v34 = vmul.f32 %v359_v27, %v295_v2  ;;  %v366_v35 = vmul.f32 1.442695, %v362_v28  ;;  %v1175_v27 = vmov -1.0  }
 0x19a   :  { %1042 = vrcp.f32 %v303_v9  ;;  %v296_v13 = vand.u32 2147483647, %v1299_v11  ;;  %v1305_v14 = vmul.f32 0.70710677, %v1301_v12  ;;  %v290_v28 = vsel %vm286_vm5, 1.0, %v1175_v27 }
 0x19b   :  { %v368_v44 = vmul.f32 1.442695, %v363_v34  ;;  %vm288_vm7 = vcmp.ge.f32.partialorder %v1299_v11, 0.0 }
 0x19c   :  { %v300_v15 = vmul.f32 0.3275911, %v296_v13  ;;  %v297_v16 = vand.u32 2147483647, %v1305_v14  ;;  %v360_v39 = vsub.f32 0.0, %v296_v13  ;;  %vm289_vm8 = vcmp.ge.f32.partialorder %v1305_v14, 0.0 }
 0x19e   :  { %v304_v17 = vadd.f32 1.0, %v300_v15  ;;  %v301_v18 = vmul.f32 0.3275911, %v297_v16  ;;  %v361_v48 = vsub.f32 0.0, %v297_v16  ;;  %v364_v50 = vmul.f32 %v360_v39, %v296_v13 }
 0x1a0   :  { %1044 = vrcp.f32 %v304_v17  ;;  %v305_v19 = vadd.f32 1.0, %v301_v18  ;;  %v365_v62 = vmul.f32 %v361_v48, %v297_v16  ;;  %v370_v1 = vmul.f32 1.442695, %v364_v50 }
 0x1a2   :  { %v1041_v20 = vpop.eup %1040  ;;  %1046 = vrcp.f32 %v305_v19  ;;  %v372_v10 = vmul.f32 1.442695, %v365_v62 }
 0x1a3   :  { %v310_v21 = vmul.f32 %v1041_v20, %v302_v4  ;;  %1048 = vpow2.f32 %v366_v35 }
 0x1a4   :  { %v1043_v23 = vpop.eup %1042  ;;  %1050 = vpow2.f32 %v368_v44 }
 0x1a5   :  { %v314_v24 = vsub.f32 2.0, %v310_v21  ;;  %v311_v25 = vmul.f32 %v1043_v23, %v303_v9  ;;  %1052 = vpow2.f32 %v370_v1 }
 0x1a6   :  { %1054 = vpow2.f32 %v372_v10 }
 0x1a7   :  { %v318_v26 = vmul.f32 %v1041_v20, %v314_v24  ;;  %v315_v29 = vsub.f32 2.0, %v311_v25 }
 0x1a9   :  { %v322_v30 = vmul.f32 1.0614054, %v318_v26  ;;  %v319_v31 = vmul.f32 %v1043_v23, %v315_v29 }
 0x1aa   :  { %v1045_v32 = vpop.eup %1044 }
 0x1ab   :  { %v894_v33 = vadd.f32 -1.4531521, %v322_v30  ;;  %v323_v36 = vmul.f32 1.0614054, %v319_v31  ;;  %v312_v37 = vmul.f32 %v1045_v32, %v304_v17 }
 0x1ac   :  { %v1047_v40 = vpop.eup %1046 }
 0x1ad   :  { %v330_v38 = vmul.f32 %v894_v33, %v318_v26  ;;  %v895_v41 = vadd.f32 -1.4531521, %v323_v36  ;;  %v316_v42 = vsub.f32 2.0, %v312_v37  ;;  %v313_v45 = vmul.f32 %v1047_v40, %v305_v19  ;;  %v1049_v17 = vpop.eup %1048 }
 0x1ae   :  { %v1051_v23 = vpop.eup %1050 }
 0x1af   :  { %v334_v43 = vadd.f32 1.4214138, %v330_v38  ;;  %v331_v46 = vmul.f32 %v895_v41, %v319_v31  ;;  %v320_v47 = vmul.f32 %v1045_v32, %v316_v42  ;;  %v317_v51 = vsub.f32 2.0, %v313_v45  ;;  %v1053_v39 = vpop.eup %1052 }
 0x1b0   :  { %v387_v42 = vmul.f32 0.5, %v1289_v61  ;;  %v388_v61 = vmul.f32 0.5, %v1296_v7  ;;  %v1034_v7 = vld [vmem:[#allocation9 + $0x90] sm:$0xff]  }
 0x1b1   :  { %v338_v49 = vmul.f32 %v334_v43, %v318_v26  ;;  %v335_v52 = vadd.f32 1.4214138, %v331_v46  ;;  %v324_v53 = vmul.f32 1.0614054, %v320_v47  ;;  %v321_v56 = vmul.f32 %v1047_v40, %v317_v51  ;;  %v1055_v46 = vpop.eup %1054 }
 0x1b3   :  { %v898_v55 = vadd.f32 -0.28449672, %v338_v49  ;;  %v339_v58 = vmul.f32 %v335_v52, %v319_v31  ;;  %v896_v59 = vadd.f32 -1.4531521, %v324_v53  ;;  %v325_v2 = vmul.f32 1.0614054, %v321_v56 }
 0x1b4   :  { %v292_v49 = vsel %vm288_vm7, 1.0, %v1175_v27 }
 0x1b5   :  { %v346_v63 = vmul.f32 %v898_v55, %v318_v26  ;;  %v899_v3 = vadd.f32 -0.28449672, %v339_v58  ;;  %v332_v4 = vmul.f32 %v896_v59, %v320_v47  ;;  %v897_v6 = vadd.f32 -1.4531521, %v325_v2 }
 0x1b6   :  { %v293_v55 = vsel %vm289_vm8, 1.0, %v1175_v27  ;;  %v389_v59 = vmul.f32 0.5, %v1301_v12 }
 0x1b7   :  { %v350_v5 = vadd.f32 0.2548296, %v346_v63  ;;  %v347_v8 = vmul.f32 %v899_v3, %v319_v31  ;;  %v336_v9 = vadd.f32 1.4214138, %v332_v4  ;;  %v333_v15 = vmul.f32 %v897_v6, %v321_v56 }
 0x1b9   :  { %v354_v13 = vmul.f32 %v350_v5, %v318_v26  ;;  %v351_v18 = vadd.f32 0.2548296, %v347_v8  ;;  %v340_v19 = vmul.f32 %v336_v9, %v320_v47  ;;  %v337_v16 = vadd.f32 1.4214138, %v333_v15  ;;  %v1033_v5 = vld [vmem:[#allocation9 + $0x88] sm:$0xff]   ;;  %v1035_v9 = vld [vmem:[#allocation9 + $0x98] sm:$0xff]  }
 0x1ba   :  { %v1037_v15 = vld [vmem:[#allocation9 + $0xa8] sm:$0xff]  }
 0x1bb   :  { %v374_v20 = vmul.f32 %v1049_v17, %v354_v13  ;;  %v355_v21 = vmul.f32 %v351_v18, %v319_v31  ;;  %v900_v22 = vadd.f32 -0.28449672, %v340_v19  ;;  %v341_v25 = vmul.f32 %v337_v16, %v321_v56  ;;  %v1036_v13 = vld [vmem:[#allocation9 + $0xa0] sm:$0xff]   ;;  %v1039_v17 = vld [vmem:[#allocation9 + $0xb8] sm:$0xff]  }
 0x1bc   :  { %v291_v31 = vsel %vm287_vm6, 1.0, %v1175_v27 }
 0x1bd   :  { %v378_v24 = vsub.f32 1.0, %v374_v20  ;;  %v375_v26 = vmul.f32 %v1051_v23, %v355_v21  ;;  %v348_v29 = vmul.f32 %v900_v22, %v320_v47  ;;  %v901_v32 = vadd.f32 -0.28449672, %v341_v25 }
 0x1bf   :  { %v382_v30 = vmul.f32 %v378_v24, %v290_v28  ;;  %v379_v33 = vsub.f32 1.0, %v375_v26  ;;  %v352_v34 = vadd.f32 0.2548296, %v348_v29  ;;  %v349_v36 = vmul.f32 %v901_v32, %v321_v56 }
 0x1c1   :  { %v390_v35 = vadd.f32 1.0, %v382_v30  ;;  %v383_v37 = vmul.f32 %v379_v33, %v291_v31  ;;  %v356_v38 = vmul.f32 %v352_v34, %v320_v47  ;;  %v353_v41 = vadd.f32 0.2548296, %v349_v36  ;;  %v902_v33 = vld [vmem:[%s1379_s4] ss:$0 sm:$0xff]  ;;  %s1176_s4 = smov [#allocation10]  }
 0x1c2   :  { %s866_s8 = sshll.u32 %s1176_s4, 4  ;;  %s867_s8 = int_to_ptr.vmem [resolvable:$true] %s866_s8 }
 0x1c3   :  { %v394_v40 = vmul.f32 %v390_v35, %v386_v60  ;;  %v391_v0 = vadd.f32 1.0, %v383_v37  ;;  %v376_v43 = vmul.f32 %v1053_v39, %v356_v38  ;;  %v357_v45 = vmul.f32 %v353_v41, %v321_v56  ;;  %s1138_s9 = scalar_lea.vmem %s867_s8, 256  ;;  %p1143_p11 = scmp.lt.s32.totalorder %s867_s8, %s867_s8 }
 0x1c4   :  { %p1139_p10 = scmp.ne.s32.totalorder %s867_s8, %s1138_s9  ;;  %p1144_p12 = scmp.lt.s32.totalorder %s1138_s9, %s1138_s9 }
 0x1c5   :  { %v418_v44 = vrot.slane %v394_v40, 1  ;;  %v395_v48 = vmul.f32 %v391_v0, %v387_v42  ;;  %v380_v57 = vsub.f32 1.0, %v376_v43  ;;  %v377_v47 = vmul.f32 %v1055_v46, %v357_v45 }
 0x1c6   :  { %p1145_p13 = por %p1144_p12, %p1143_p11 }
 0x1c7   :  { %422 = vst [vmem:[#allocation3 + $0x28] sm:$0x7f] %v418_v44  ;;  %v402_v50 = vrot.slane %v395_v48, 7  ;;  %v384_v51 = vmul.f32 %v380_v57, %v292_v49  ;;  %v439_v52 = vpack.c.bf16 %v395_v48, %v394_v40  ;;  %v381_v53 = vsub.f32 1.0, %v377_v47 }
 0x1c8   :  { %p1146_p0 = pnand %p1145_p13, %p1139_p10 }
 0x1c9   :  { %406 = vst [vmem:[#allocation3] sm:$0xfe] %v402_v50  ;;  %v392_v11 = vadd.f32 1.0, %v384_v51  ;;  %675 = vmatprep.mubr.bf16.mxu1 %v439_v52  ;;  %v385_v56 = vmul.f32 %v381_v53, %v293_v55 }
 0x1cb   :  { %v396_v58 = vmul.f32 %v392_v11, %v388_v61  ;;  %v393_v62 = vadd.f32 1.0, %v385_v56 }
 0x1cd   :  { %v419_v63 = vrot.slane %v396_v58, 1  ;;  %v397_v1 = vmul.f32 %v393_v62, %v389_v59 }
 0x1ce   :  { %v431_v6 = vld [vmem:[#allocation3 + $0x28] sm:$0xff] }
 0x1cf   :  { %423 = vst [vmem:[#allocation3 + $0x58] sm:$0x7f] %v419_v63  ;;  %v403_v14 = vrot.slane %v397_v1, 7  ;;  %v442_v3 = vpack.c.bf16 %v397_v1, %v396_v58  ;;  %v440_v10 = vpack.c.bf16 %v431_v6, %v395_v48 }
 0x1d0   :  { %v426_v2 = vld [vmem:[#allocation3] sm:$0xff] }
 0x1d1   :  { %v438_v4 = vpack.c.bf16 %v394_v40, %v426_v2  ;;  %407 = vst [vmem:[#allocation3 + $0x30] sm:$0xfe] %v403_v14 }
 0x1d3   :  { %676 = vmatmul.mubr.bf16.vlgmr.msra.gmra.mrb[0].mxu1 %v438_v4 }
 0x1d4   :  { %974 = vmatpush3.bf16.msra.mxu1 %v1278_v54  ;;  %683 = vmatprep.mubr.bf16.mxu1 %v442_v3  ;;  %v1038_v54 = vld [vmem:[#allocation9 + $0xb0] sm:$0xff]  }
 0x1d5   :  { %975 = vmatprep.subr.bf16.mxu1 %v1033_v5 }
 0x1d6   :  { %v437_v18 = vld [vmem:[#allocation3 + $0x58] sm:$0xff] }
 0x1d7   :  { %v443_v19 = vpack.c.bf16 %v437_v18, %v397_v1 }
 0x1d8   :  { %976 = vmatpush3.bf16.msra.mxu1 %v1033_v5  ;;  %v432_v12 = vld [vmem:[#allocation3 + $0x30] sm:$0xff] }
 0x1d9   :  { %977 = vmatprep.subr.bf16.mxu1 %v1034_v7  ;;  %v441_v8 = vpack.c.bf16 %v396_v58, %v432_v12 }
 0x1db   :  { %684 = vmatmul.mubr.bf16.gmra.mrb[4].mxu1 %v441_v8 }
 0x1dc   :  { %978 = vmatpush3.bf16.msra.mxu1 %v1034_v7  ;;  %989 = vmatprep.mubr.bf16.mxu1 %v440_v10 }
 0x1dd   :  { %979 = vmatprep.subr.bf16.mxu1 %v1035_v9 }
 0x1e0   :  { %980 = vmatpush3.bf16.msra.mxu1 %v1035_v9 }
 0x1e1   :  { %981 = vmatprep.subr.bf16.mxu1 %v1036_v13 }
 0x1e4   :  { %982 = vmatpush3.bf16.msra.mxu1 %v1036_v13 }
 0x1e5   :  { %983 = vmatprep.subr.bf16.mxu1 %v1037_v15 }
 0x1e8   :  { %984 = vmatpush3.bf16.msra.mxu1 %v1037_v15 }
 0x1e9   :  { %985 = vmatprep.subr.bf16.mxu1 %v1038_v54 }
 0x1ec   :  { %986 = vmatpush3.bf16.msra.mxu1 %v1038_v54 }
 0x1ed   :  { %987 = vmatprep.subr.bf16.mxu1 %v1039_v17 }
 0x1f0   :  { %988 = vmatpush3.bf16.msra.mxu1 %v1039_v17 }
 0x1f3   :  { %990 = vmatmul.mubr.bf16.vlgmr.msra.gmra.mrb[8].mxu1 %v443_v19 }
 0x2a6   :  { %v951_v20 = vpop.f32.mrb[0].mxu1 }
 0x2a7   :  { %v952_v16 = vpop.f32.mrb[1].mxu1 }
 0x2a8   :  { %v953_v21 = vadd.f32 %v952_v16, %v951_v20  ;;  %v954_v22 = vpop.f32.mrb[2].mxu1 }
 0x2a9   :  { %v955_v23 = vpop.f32.mrb[3].mxu1 }
 0x2aa   :  { %v956_v24 = vadd.f32 %v955_v23, %v954_v22  ;;  %v678_v35 = vadd.f32 %v953_v21, %v902_v33 }
 0x2ac   :  { %v681_v40 = vadd.f32 %v956_v24, %v902_v33 }
 0x2ae   :  { %v957_v25 = vpop.f32.mrb[4].mxu1 }
 0x2af   :  { %v958_v28 = vpop.f32.mrb[5].mxu1 }
 0x2b0   :  { %v959_v26 = vadd.f32 %v958_v28, %v957_v25  ;;  %v960_v29 = vpop.f32.mrb[6].mxu1 }
 0x2b1   :  { %v961_v30 = vpop.f32.mrb[7].mxu1 }
 0x2b2   :  { %v962_v32 = vadd.f32 %v961_v30, %v960_v29  ;;  %v686_v34 = vadd.f32 %v959_v26, %v902_v33 }
 0x2b4   :  { %v689_v37 = vadd.f32 %v962_v32, %v902_v33 }
 0x2c6   :  { %v991_v60 = vpop.f32.mrb[8].mxu1 }
 0x2c7   :  { %v1324_v31 = vadd.f32 %v991_v60, %v686_v34  ;;  %v726_v36 = vpop.f32.mrb[9].mxu1 }
 0x2c8   :  { %v1326_v38 = vadd.f32 %v726_v36, %v678_v35  ;;  %v992_v39 = vpop.f32.mrb[10].mxu1 }
 0x2c9   :  { %v1329_v41 = vmul.f32 0.70710677, %v1324_v31  ;;  %v1331_v42 = vadd.f32 %v992_v39, %v689_v37  ;;  %v729_v0 = vpop.f32.mrb[11].mxu1 }
 0x2ca   :  { %v1334_v43 = vmul.f32 0.70710677, %v1326_v38  ;;  %v1336_v44 = vadd.f32 %v729_v0, %v681_v40 }
 0x2cb   :  { %v755_v45 = vand.u32 2147483647, %v1329_v41  ;;  %v1340_v46 = vmul.f32 0.70710677, %v1331_v42  ;;  %vm747_vm9 = vcmp.ge.f32.partialorder %v1329_v41, 0.0 }
 0x2cc   :  { %v753_v48 = vand.u32 2147483647, %v1334_v43  ;;  %v1344_v57 = vmul.f32 0.70710677, %v1336_v44  ;;  %vm745_vm10 = vcmp.ge.f32.partialorder %v1334_v43, 0.0 }
 0x2cd   :  { %v759_v49 = vmul.f32 0.3275911, %v755_v45  ;;  %v756_v50 = vand.u32 2147483647, %v1340_v46  ;;  %v819_v63 = vsub.f32 0.0, %v755_v45  ;;  %vm748_vm11 = vcmp.ge.f32.partialorder %v1340_v46, 0.0 }
 0x2ce   :  { %v757_v47 = vmul.f32 0.3275911, %v753_v48  ;;  %v754_v52 = vand.u32 2147483647, %v1344_v57  ;;  %v817_v2 = vsub.f32 0.0, %v753_v48  ;;  %v749_v41 = vsel %vm745_vm10, 1.0, %v1175_v27 }
 0x2cf   :  { %v763_v51 = vadd.f32 1.0, %v759_v49  ;;  %v760_v61 = vmul.f32 0.3275911, %v756_v50  ;;  %v823_v12 = vmul.f32 %v819_v63, %v755_v45  ;;  %v820_v9 = vsub.f32 0.0, %v756_v50 }
 0x2d0   :  { %v761_v53 = vadd.f32 1.0, %v757_v47  ;;  %v758_v11 = vmul.f32 0.3275911, %v754_v52  ;;  %v821_v13 = vmul.f32 %v817_v2, %v753_v48  ;;  %v818_v18 = vsub.f32 0.0, %v754_v52 }
 0x2d1   :  { %1056 = vrcp.f32 %v763_v51  ;;  %v764_v55 = vadd.f32 1.0, %v760_v61  ;;  %v829_v21 = vmul.f32 1.442695, %v823_v12  ;;  %v824_v23 = vmul.f32 %v820_v9, %v756_v50 }
 0x2d2   :  { %1058 = vrcp.f32 %v761_v53  ;;  %v762_v56 = vadd.f32 1.0, %v758_v11  ;;  %v825_v25 = vmul.f32 1.442695, %v821_v13  ;;  %v822_v30 = vmul.f32 %v818_v18, %v754_v52 }
 0x2d3   :  { %1060 = vrcp.f32 %v764_v55  ;;  %v831_v35 = vmul.f32 1.442695, %v824_v23  ;;  %v751_v13 = vsel %vm747_vm9, 1.0, %v1175_v27  ;;  %vm746_vm12 = vcmp.ge.f32.partialorder %v1344_v57, 0.0 }
 0x2d4   :  { %1062 = vrcp.f32 %v762_v56  ;;  %v827_v0 = vmul.f32 1.442695, %v822_v30  ;;  %v752_v43 = vsel %vm748_vm11, 1.0, %v1175_v27  ;;  %v847_v23 = vmul.f32 0.5, %v1324_v31 }
 0x2d5   :  { %1064 = vpow2.f32 %v829_v21  ;;  %v846_v57 = vmul.f32 0.5, %v1336_v44 }
 0x2d6   :  { %1066 = vpow2.f32 %v825_v25  ;;  %v848_v25 = vmul.f32 0.5, %v1331_v42 }
 0x2d7   :  { %1068 = vpow2.f32 %v831_v35 }
 0x2d8   :  { %1070 = vpow2.f32 %v827_v0 }
 0x2db   :  { %v1057_v58 = vpop.eup %1056 }
 0x2dc   :  { %v1059_v59 = vpop.eup %1058  ;;  %v771_v62 = vmul.f32 %v1057_v58, %v763_v51 }
 0x2dd   :  { %v769_v1 = vmul.f32 %v1059_v59, %v761_v53  ;;  %v1061_v3 = vpop.eup %1060 }
 0x2de   :  { %v775_v14 = vsub.f32 2.0, %v771_v62  ;;  %v772_v7 = vmul.f32 %v1061_v3, %v764_v55  ;;  %v1063_v6 = vpop.eup %1062 }
 0x2df   :  { %v773_v4 = vsub.f32 2.0, %v769_v1  ;;  %v770_v54 = vmul.f32 %v1063_v6, %v762_v56  ;;  %v1065_v63 = vpop.eup %1064 }
 0x2e0   :  { %v779_v5 = vmul.f32 %v1057_v58, %v775_v14  ;;  %v776_v15 = vsub.f32 2.0, %v772_v7  ;;  %v1067_v14 = vpop.eup %1066 }
 0x2e1   :  { %v777_v8 = vmul.f32 %v1059_v59, %v773_v4  ;;  %v774_v16 = vsub.f32 2.0, %v770_v54 }
 0x2e2   :  { %v783_v10 = vmul.f32 1.0614054, %v779_v5  ;;  %v780_v20 = vmul.f32 %v1061_v3, %v776_v15 }
 0x2e3   :  { %v781_v17 = vmul.f32 1.0614054, %v777_v8  ;;  %v778_v26 = vmul.f32 %v1063_v6, %v774_v16 }
 0x2e4   :  { %v929_v19 = vadd.f32 -1.4531521, %v783_v10  ;;  %v784_v28 = vmul.f32 1.0614054, %v780_v20  ;;  %v1069_v10 = vpop.eup %1068 }
 0x2e5   :  { %v927_v22 = vadd.f32 -1.4531521, %v781_v17  ;;  %v782_v34 = vmul.f32 1.0614054, %v778_v26  ;;  %v1071_v17 = vpop.eup %1070 }
 0x2e6   :  { %v791_v24 = vmul.f32 %v929_v19, %v779_v5  ;;  %v930_v33 = vadd.f32 -1.4531521, %v784_v28 }
 0x2e7   :  { %v789_v29 = vmul.f32 %v927_v22, %v777_v8  ;;  %v928_v39 = vadd.f32 -1.4531521, %v782_v34 }
 0x2e8   :  { %v795_v32 = vadd.f32 1.4214138, %v791_v24  ;;  %v792_v37 = vmul.f32 %v930_v33, %v780_v20  ;;  %v750_v24 = vsel %vm746_vm12, 1.0, %v1175_v27 }
 0x2e9   :  { %v793_v60 = vadd.f32 1.4214138, %v789_v29  ;;  %v790_v49 = vmul.f32 %v928_v39, %v778_v26  ;;  %v845_v29 = vmul.f32 0.5, %v1326_v38 }
 0x2ea   :  { %v799_v36 = vmul.f32 %v795_v32, %v779_v5  ;;  %v796_v48 = vadd.f32 1.4214138, %v792_v37 }
 0x2eb   :  { %v797_v40 = vmul.f32 %v793_v60, %v777_v8  ;;  %v794_v52 = vadd.f32 1.4214138, %v790_v49 }
 0x2ec   :  { %v933_v45 = vadd.f32 -0.28449672, %v799_v36  ;;  %v800_v51 = vmul.f32 %v796_v48, %v780_v20 }
 0x2ed   :  { %v931_v47 = vadd.f32 -0.28449672, %v797_v40  ;;  %v798_v55 = vmul.f32 %v794_v52, %v778_v26 }
 0x2ee   :  { %v807_v50 = vmul.f32 %v933_v45, %v779_v5  ;;  %v934_v11 = vadd.f32 -0.28449672, %v800_v51 }
 0x2ef   :  { %v805_v53 = vmul.f32 %v931_v47, %v777_v8  ;;  %v932_v62 = vadd.f32 -0.28449672, %v798_v55 }
 0x2f0   :  { %v811_v61 = vadd.f32 0.2548296, %v807_v50  ;;  %v808_v59 = vmul.f32 %v934_v11, %v780_v20 }
 0x2f1   :  { %v809_v56 = vadd.f32 0.2548296, %v805_v53  ;;  %v806_v4 = vmul.f32 %v932_v62, %v778_v26 }
 0x2f2   :  { %v815_v58 = vmul.f32 %v811_v61, %v779_v5  ;;  %v812_v3 = vadd.f32 0.2548296, %v808_v59 }
 0x2f3   :  { %v813_v1 = vmul.f32 %v809_v56, %v777_v8  ;;  %v810_v9 = vadd.f32 0.2548296, %v806_v4 }
 0x2f4   :  { %v835_v2 = vmul.f32 %v1065_v63, %v815_v58  ;;  %v816_v12 = vmul.f32 %v812_v3, %v780_v20 }
 0x2f5   :  { %v833_v7 = vmul.f32 %v1067_v14, %v813_v1  ;;  %v814_v54 = vmul.f32 %v810_v9, %v778_v26 }
 0x2f6   :  { %v839_v6 = vsub.f32 1.0, %v835_v2  ;;  %v836_v8 = vmul.f32 %v1069_v10, %v816_v12 }
 0x2f7   :  { %v837_v5 = vsub.f32 1.0, %v833_v7  ;;  %v834_v16 = vmul.f32 %v1071_v17, %v814_v54 }
 0x2f8   :  { %v843_v15 = vmul.f32 %v839_v6, %v751_v13  ;;  %v840_v19 = vsub.f32 1.0, %v836_v8 }
 0x2f9   :  { %v841_v18 = vmul.f32 %v837_v5, %v749_v41  ;;  %v838_v22 = vsub.f32 1.0, %v834_v16 }
 0x2fa   :  { %v851_v20 = vadd.f32 1.0, %v843_v15  ;;  %v844_v21 = vmul.f32 %v840_v19, %v752_v43 }
 0x2fb   :  { %v849_v46 = vadd.f32 1.0, %v841_v18  ;;  %v842_v26 = vmul.f32 %v838_v22, %v750_v24 }
 0x2fc   :  { %v852_v28 = vadd.f32 1.0, %v844_v21  ;;  %v855_v30 = vmul.f32 %v851_v20, %v847_v23 }
 0x2fd   :  { %v850_v33 = vadd.f32 1.0, %v842_v26  ;;  %v853_v34 = vmul.f32 %v849_v46, %v845_v29 }
 0x2fe   :  { %v856_v32 = vmul.f32 %v852_v28, %v848_v25 }
 0x2ff   :  { %v854_v60 = vmul.f32 %v850_v33, %v846_v57 }
 0x300   :  { %v858_v35 = vmax.f32 %v855_v30, %v856_v32 }
 0x301   :  { %v857_v31 = vmax.f32 %v853_v34, %v854_v60 }
 0x302   :  { %860 = vst [vmem:[#allocation10 + $0x8] sm:$0xff] %v858_v35 }
 0x303   :  { %859 = vst [vmem:[#allocation10] sm:$0xff] %v857_v31 }
 0x304   :  { %1149 = shalt.err (!%p1146_p0)
}
 0x305   :  { %s1150_s12 = scalar_lea.hbm %s1380_s5, 256 }
 0x306   :  { %p1151_p1 = scmp.ne.s32.totalorder %s1380_s5, %s1150_s12  ;;  %p1154_p2 = scmp.lt.u32.totalorder %s1150_s12, %s1380_s5 }
 0x308   :  { %p1156_p3 = pnand %p1154_p2, %p1151_p1 }
 0x30a   :  { %1159 = shalt.err (!%p1156_p3)
}
 0x30b   :  { %872 = dma.vmem_to_hbm [thread:$0]  %s867_s8, 256, %s1380_s5, [#allocation6], %s1170_s1, %s1170_s1, %s1171_s17  }
 0x30c   :  { %1164 = dma.done.wait [#allocation6], 256  }
 0x30d   :  { %1165 = vsyncadd [#allocation6], 4294967040 }
 0x30e   :  { %876 = vsyncpa [#allocation5], 1 }
 0x30f   :  { %877 = vsyncpa [#allocation8], 1 }
 0x310   :  { %878 = vsyncpa [#allocation6], 1 }

</bundles_post_ra>
